<compile_context>
chip_gen: v5e
topology: v5e:2x2
jax: 0.10.0
libtpu: 0.0.40
codegen_flags: <defaults>
</compile_context>

<pallas_src>
import functools

import jax
import jax.numpy as jnp
from jax.experimental import pallas as pl
from jax.experimental.pallas import tpu as pltpu


_HALO = 128  # one lane-tile of look-ahead; must cover ceil(K/stride)-1 lanes


def _round_up(v, m):
    return (v + m - 1) // m * m


def _pick_tile(l_out, tile_l, n_batch):
    """Pick the L_out tile.

    Preference order: big tiles (amortize ~0.35us/step overhead + fixed halo
    DMA), an exact divisor of l_out when l_out % 128 == 0 (no padded output
    -> no trailing HBM slice), and >= 2 total grid steps (v7x has 2 TCs).
    Returns (tl, n_tiles, l_out_pad).
    """
    l128 = _round_up(l_out, 128)
    tl = min(_round_up(tile_l, 128), l128)
    if n_batch * pl.cdiv(l128, tl) < 2 and l128 >= 256:
        tl = _round_up(l128 // 2, 128)          # keep both v7x TensorCores busy
    if l_out % 128 == 0:
        for cand in range(tl, max(tl // 2, 128) - 1, -128):
            if l_out % cand == 0:
                return cand, l_out // cand, l_out
    n_t = pl.cdiv(l_out, tl)
    return tl, n_t, n_t * tl


def _conv1d_kernel(x_ref, xh_ref, w_ref, b_ref, o_ref, win_ref, stk_ref,
                   *, n_q, sc, alpha):
    """out[C_out, TL] = leaky_relu( W_flat @ X_stack + b ), lane-dense output.

    x_ref  : (1, sc, TL)        phase-split input, current L_out tile
    xh_ref : (1, sc, HALO)      next lane-tile (halo for the tap overlap)
    w_ref  : (C_out, n_q*sc)    tap-flattened weights
    b_ref  : (C_out, 1)         bias (f32)
    o_ref  : (1, C_out, TL)     output tile (already NCL order)
    win_ref: (sc, TL+HALO)      VMEM scratch: halo'd window, built once/step
    stk_ref: (n_q*sc, TL)       VMEM scratch: stacked shifted slices (dot RHS)
    """
    tl = o_ref.shape[2]

    # 1) assemble the halo'd window once per step (both copies lane-aligned).
    win_ref[:, :tl] = x_ref[0]
    win_ref[:, tl:] = xh_ref[0]

    # 2) stack the n_q lane-shifted views along sublanes.  Destination offsets
    #    q*sc are sublane-aligned (sc = stride*C_in); shifts q are small static
    #    lane offsets (q < ceil(K/stride) <= HALO).
    for q in range(n_q):
        stk_ref[q * sc:(q + 1) * sc, :] = win_ref[:, q:q + tl]

    # 3) single MXU contraction over K*C_in (f32 accumulation) + fused epilogue.
    acc = jnp.dot(w_ref[...], stk_ref[...], preferred_element_type=jnp.float32)
    acc = acc + b_ref[...].astype(jnp.float32)
    # leaky-relu (valid for 0 <= alpha <= 1, the module's regime)
    o_ref[0] = jnp.maximum(acc, alpha * acc).astype(o_ref.dtype)


def conv1d_leaky_relu(x, weight, bias, *, stride=4, padding=11, alpha=0.2,
                      tile_l=2048, compute_dtype=jnp.bfloat16):
    """Fused Conv1d(stride, padding) + LeakyReLU(alpha).

    x: (N, C_in, L) NCL, weight: (C_out, C_in, K), bias: (C_out,)
    -> (N, C_out, L_out) NCL, dtype of x.
    """
    assert 0.0 <= alpha <= 1.0, "leaky-relu epilogue assumes 0 <= alpha <= 1"
    n, c_in, length = x.shape
    c_out, _, k = weight.shape
    l_out = (length + 2 * padding - k) // stride + 1
    assert l_out > 0
    n_q = pl.cdiv(k, stride)              # lane shifts (taps per phase)
    assert n_q <= _HALO, "tap overlap must fit in the 128-lane halo"
    sc = stride * c_in                    # rows of the phase-split input

    # --- L_out tiling --------------------------------------------------------
    tl, n_tiles, l_out_pad = _pick_tile(l_out, tile_l, n)
    l_ph = l_out_pad + _HALO              # phase-split length incl. halo tile
    total = stride * l_ph                 # padded input length consumed

    # --- single layout pass: cast + pad + phase-split (fused by XLA) ---------
    #   x_ph[n, r*C_in + c, m] == x_padded[n, c, m*stride + r]
    # TODO(synk): could be removed entirely by strided in-kernel DMA from an
    # ANY-space ref; kept as one fused HBM pass (cast folded in) for robustness.
    if compute_dtype is None:
        compute_dtype = x.dtype
    pad_r = max(0, total - length - padding)
    x_pad = jnp.pad(x.astype(compute_dtype),
                    ((0, 0), (0, 0), (padding, pad_r)))[:, :, :total]
    x_ph = (x_pad.reshape(n, c_in, l_ph, stride)
                 .transpose(0, 3, 1, 2)
                 .reshape(n, sc, l_ph))

    # --- tap-flattened weights -----------------------------------------------
    #   W_flat[co, q*sc + r*C_in + ci] = weight[co, ci, q*stride + r]  (0-padded)
    k_pad = n_q * stride
    w_flat = (jnp.pad(weight, ((0, 0), (0, 0), (0, k_pad - k)))
                 .reshape(c_out, c_in, n_q, stride)
                 .transpose(0, 2, 3, 1)
                 .reshape(c_out, n_q * sc)
                 .astype(compute_dtype))
    b_r = bias.reshape(c_out, 1).astype(jnp.float32)

    kernel = functools.partial(_conv1d_kernel, n_q=n_q, sc=sc, alpha=alpha)

    halo_blocks = tl // _HALO
    flops = 2 * n * l_out_pad * c_out * c_in * k
    bytes_accessed = (x_ph.size * x_ph.dtype.itemsize
                      + w_flat.size * w_flat.dtype.itemsize
                      + b_r.size * 4
                      + n * c_out * l_out_pad * x.dtype.itemsize)

    # VMEM/step ~ win + stk + 2x(in, halo, out) blocks: < 1 MiB at default
    # sizes -> far under scoped VMEM on every generation (incl. v7x).
    # TODO(synk): add a C_out tile axis + VMEM f32 accumulator once C_out*TL*4
    # approaches vreg capacity (deep wavegan layers, C_out >= 512); consider
    # pipeline_mode=pl.Buffered(3) on the input spec on v6e.
    out = pl.pallas_call(
        kernel,
        out_shape=jax.ShapeDtypeStruct((n, c_out, l_out_pad), x.dtype),
        grid_spec=pltpu.PrefetchScalarGridSpec(
            num_scalar_prefetch=0,
            grid=(n, n_tiles),
            in_specs=[
                # current L_out tile of the phase-split input
                pl.BlockSpec((1, sc, tl), lambda b, j: (b, 0, j)),
                # 128-lane halo: the lane-tile right after the current tile
                pl.BlockSpec((1, sc, _HALO),
                             lambda b, j: (b, 0, (j + 1) * halo_blocks)),
                # flattened weights & bias: whole blocks, VMEM-resident
                pl.BlockSpec((c_out, n_q * sc), lambda b, j: (0, 0)),
                pl.BlockSpec((c_out, 1), lambda b, j: (0, 0)),
            ],
            out_specs=pl.BlockSpec((1, c_out, tl), lambda b, j: (b, 0, j)),
            scratch_shapes=[
                pltpu.VMEM((sc, tl + _HALO), compute_dtype),   # halo'd window
                pltpu.VMEM((n_q * sc, tl), compute_dtype),     # stacked RHS
            ],
        ),
        compiler_params=pltpu.CompilerParams(
            dimension_semantics=("parallel", "parallel")),
        cost_estimate=pl.CostEstimate(flops=flops, transcendentals=0,
                                      bytes_accessed=bytes_accessed),
    )(x_ph, x_ph, w_flat, b_r)

    if l_out_pad != l_out:                # only when L_out is not 128-aligned
        out = out[:, :, :l_out]
    return out


if __name__ == "__main__":
    # Small shapes consistent with the wavegan Conv1D block.
    batch = 2
    input_channels = 4
    output_channels = 8
    kernel_size = 25
    length = 1024
    stride = 4
    padding = 11
    alpha = 0.2

    key = jax.random.PRNGKey(0)
    kx, kw, kb = jax.random.split(key, 3)

    # Deterministic parameter init (PyTorch-style uniform bound).
    fan_in = input_channels * kernel_size
    bound = 1.0 / (fan_in ** 0.5)
    weight = jax.random.uniform(
        kw, (output_channels, input_channels, kernel_size),
        minval=-bound, maxval=bound, dtype=jnp.float32)
    bias = jax.random.uniform(
        kb, (output_channels,), minval=-bound, maxval=bound, dtype=jnp.float32)
    x = jax.random.normal(kx, (batch, input_channels, length), dtype=jnp.float32)

    # Reference (pure JAX/XLA conv + leaky relu) — silent unless a check fails.
    ref = jax.lax.conv_general_dilated(
        x, weight, window_strides=(stride,), padding=[(padding, padding)],
        dimension_numbers=("NCH", "OIH", "NCH")) + bias[None, :, None]
    ref = jnp.where(ref >= 0, ref, alpha * ref)

    # 1) exact-math check (f32 compute path), tight tolerance.
    out_f32 = jax.block_until_ready(conv1d_leaky_relu(
        x, weight, bias, stride=stride, padding=padding, alpha=alpha,
        compute_dtype=jnp.float32))
    assert out_f32.shape == ref.shape, (out_f32.shape, ref.shape)
    assert jnp.allclose(out_f32, ref, atol=1e-4, rtol=1e-4), \
        float(jnp.max(jnp.abs(out_f32 - ref)))

    # 2) default path (bf16 compute, f32 accumulation), looser tolerance.
    out = jax.block_until_ready(conv1d_leaky_relu(
        x, weight, bias, stride=stride, padding=padding, alpha=alpha))
    assert out.shape == ref.shape, (out.shape, ref.shape)
    assert jnp.allclose(out, ref, atol=5e-2, rtol=5e-2), \
        float(jnp.max(jnp.abs(out - ref)))

    print("KERNEL_OK")
</pallas_src>

<mosaic_0001>
module attributes {stable_mosaic.version = 11 : i64} {
  func.func @_conv1d_kernel(%arg0: i32, %arg1: i32, %arg2: memref<1x16x256xf32, #tpu.memory_space<vmem>>, %arg3: memref<1x16x128xf32, #tpu.memory_space<vmem>>, %arg4: memref<8x112xf32, #tpu.memory_space<vmem>>, %arg5: memref<8x1xf32, #tpu.memory_space<vmem>>, %arg6: memref<1x8x256xf32, #tpu.memory_space<vmem>>, %arg7: memref<16x384xf32, #tpu.memory_space<vmem>>, %arg8: memref<112x256xf32, #tpu.memory_space<vmem>>) attributes {dimension_semantics = [#tpu.dimension_semantics<parallel>, #tpu.dimension_semantics<parallel>], iteration_bounds = array<i64: 2, 1>, scalar_prefetch = 0 : i64, scratch_operands = 2 : i64, tpu.core_type = #tpu.core_type<tc>, window_params = [{transform_indices = @transform_0, window_bounds = array<i64: 1, 16, 256>}, {transform_indices = @transform_1, window_bounds = array<i64: 1, 16, 128>}, {pipeline_mode = #tpu.pipeline_mode<synchronous>, transform_indices = @transform_2, window_bounds = array<i64: 8, 112>}, {pipeline_mode = #tpu.pipeline_mode<synchronous>, transform_indices = @transform_3, window_bounds = array<i64: 8, 1>}, {transform_indices = @transform_4, window_bounds = array<i64: 1, 8, 256>}]} {
    %c0 = arith.constant 0 : index
    %c0_0 = arith.constant 0 : index
    %c0_1 = arith.constant 0 : index
    %0 = vector.load %arg2[%c0, %c0_0, %c0_1] : memref<1x16x256xf32, #tpu.memory_space<vmem>>, vector<1x16x256xf32>
    %1 = vector.shape_cast %0 : vector<1x16x256xf32> to vector<16x256xf32>
    %c0_2 = arith.constant 0 : index
    %c0_3 = arith.constant 0 : index
    %2 = vector.load %arg7[%c0_2, %c0_3] : memref<16x384xf32, #tpu.memory_space<vmem>>, vector<16x256xf32>
    tpu.vector_store %arg7[%c0_2, %c0_3], %1 {strides = array<i32>} : memref<16x384xf32, #tpu.memory_space<vmem>>, vector<16x256xf32>,
    %c0_4 = arith.constant 0 : index
    %c0_5 = arith.constant 0 : index
    %c0_6 = arith.constant 0 : index
    %3 = vector.load %arg3[%c0_4, %c0_5, %c0_6] : memref<1x16x128xf32, #tpu.memory_space<vmem>>, vector<1x16x128xf32>
    %4 = vector.shape_cast %3 : vector<1x16x128xf32> to vector<16x128xf32>
    %c0_7 = arith.constant 0 : index
    %c256 = arith.constant 256 : index
    %5 = vector.load %arg7[%c0_7, %c256] : memref<16x384xf32, #tpu.memory_space<vmem>>, vector<16x128xf32>
    tpu.vector_store %arg7[%c0_7, %c256], %4 {strides = array<i32>} : memref<16x384xf32, #tpu.memory_space<vmem>>, vector<16x128xf32>,
    %c0_8 = arith.constant 0 : index
    %c0_9 = arith.constant 0 : index
    %6 = vector.load %arg7[%c0_8, %c0_9] : memref<16x384xf32, #tpu.memory_space<vmem>>, vector<16x256xf32>
    %c0_10 = arith.constant 0 : index
    %c0_11 = arith.constant 0 : index
    %7 = vector.load %arg8[%c0_10, %c0_11] : memref<112x256xf32, #tpu.memory_space<vmem>>, vector<16x256xf32>
    tpu.vector_store %arg8[%c0_10, %c0_11], %6 {strides = array<i32>} : memref<112x256xf32, #tpu.memory_space<vmem>>, vector<16x256xf32>,
    %c0_12 = arith.constant 0 : index
    %c1 = arith.constant 1 : index
    %8 = vector.load %arg7[%c0_12, %c1] : memref<16x384xf32, #tpu.memory_space<vmem>>, vector<16x256xf32>
    %c16 = arith.constant 16 : index
    %c0_13 = arith.constant 0 : index
    %9 = vector.load %arg8[%c16, %c0_13] : memref<112x256xf32, #tpu.memory_space<vmem>>, vector<16x256xf32>
    tpu.vector_store %arg8[%c16, %c0_13], %8 {strides = array<i32>} : memref<112x256xf32, #tpu.memory_space<vmem>>, vector<16x256xf32>,
    %c0_14 = arith.constant 0 : index
    %c2 = arith.constant 2 : index
    %10 = vector.load %arg7[%c0_14, %c2] : memref<16x384xf32, #tpu.memory_space<vmem>>, vector<16x256xf32>
    %c32 = arith.constant 32 : index
    %c0_15 = arith.constant 0 : index
    %11 = vector.load %arg8[%c32, %c0_15] : memref<112x256xf32, #tpu.memory_space<vmem>>, vector<16x256xf32>
    tpu.vector_store %arg8[%c32, %c0_15], %10 {strides = array<i32>} : memref<112x256xf32, #tpu.memory_space<vmem>>, vector<16x256xf32>,
    %c0_16 = arith.constant 0 : index
    %c3 = arith.constant 3 : index
    %12 = vector.load %arg7[%c0_16, %c3] : memref<16x384xf32, #tpu.memory_space<vmem>>, vector<16x256xf32>
    %c48 = arith.constant 48 : index
    %c0_17 = arith.constant 0 : index
    %13 = vector.load %arg8[%c48, %c0_17] : memref<112x256xf32, #tpu.memory_space<vmem>>, vector<16x256xf32>
    tpu.vector_store %arg8[%c48, %c0_17], %12 {strides = array<i32>} : memref<112x256xf32, #tpu.memory_space<vmem>>, vector<16x256xf32>,
    %c0_18 = arith.constant 0 : index
    %c4 = arith.constant 4 : index
    %14 = vector.load %arg7[%c0_18, %c4] : memref<16x384xf32, #tpu.memory_space<vmem>>, vector<16x256xf32>
    %c64 = arith.constant 64 : index
    %c0_19 = arith.constant 0 : index
    %15 = vector.load %arg8[%c64, %c0_19] : memref<112x256xf32, #tpu.memory_space<vmem>>, vector<16x256xf32>
    tpu.vector_store %arg8[%c64, %c0_19], %14 {strides = array<i32>} : memref<112x256xf32, #tpu.memory_space<vmem>>, vector<16x256xf32>,
    %c0_20 = arith.constant 0 : index
    %c5 = arith.constant 5 : index
    %16 = vector.load %arg7[%c0_20, %c5] : memref<16x384xf32, #tpu.memory_space<vmem>>, vector<16x256xf32>
    %c80 = arith.constant 80 : index
    %c0_21 = arith.constant 0 : index
    %17 = vector.load %arg8[%c80, %c0_21] : memref<112x256xf32, #tpu.memory_space<vmem>>, vector<16x256xf32>
    tpu.vector_store %arg8[%c80, %c0_21], %16 {strides = array<i32>} : memref<112x256xf32, #tpu.memory_space<vmem>>, vector<16x256xf32>,
    %c0_22 = arith.constant 0 : index
    %c6 = arith.constant 6 : index
    %18 = vector.load %arg7[%c0_22, %c6] : memref<16x384xf32, #tpu.memory_space<vmem>>, vector<16x256xf32>
    %c96 = arith.constant 96 : index
    %c0_23 = arith.constant 0 : index
    %19 = vector.load %arg8[%c96, %c0_23] : memref<112x256xf32, #tpu.memory_space<vmem>>, vector<16x256xf32>
    tpu.vector_store %arg8[%c96, %c0_23], %18 {strides = array<i32>} : memref<112x256xf32, #tpu.memory_space<vmem>>, vector<16x256xf32>,
    %c0_24 = arith.constant 0 : index
    %c0_25 = arith.constant 0 : index
    %20 = vector.load %arg4[%c0_24, %c0_25] : memref<8x112xf32, #tpu.memory_space<vmem>>, vector<8x112xf32>
    %c0_26 = arith.constant 0 : index
    %c0_27 = arith.constant 0 : index
    %21 = vector.load %arg8[%c0_26, %c0_27] : memref<112x256xf32, #tpu.memory_space<vmem>>, vector<112x256xf32>
    %cst = arith.constant dense<0.000000e+00> : vector<8x256xf32>
    %22 = tpu.matmul %20, %21, %cst {dimension_numbers = #tpu.dot_dimension_numbers<[1], [0], [0], [1], [0, 0, 1, 1], [], []>} : vector<8x112xf32>, vector<112x256xf32>, vector<8x256xf32> -> vector<8x256xf32>
    %c0_28 = arith.constant 0 : index
    %c0_29 = arith.constant 0 : index
    %23 = vector.load %arg5[%c0_28, %c0_29] : memref<8x1xf32, #tpu.memory_space<vmem>>, vector<8x1xf32>
    %24 = vector.broadcast %23 : vector<8x1xf32> to vector<8x256xf32>
    %25 = arith.addf %22, %24 : vector<8x256xf32>
    %cst_30 = arith.constant 2.000000e-01 : f32
    %26 = vector.broadcast %cst_30 : f32 to vector<8x256xf32>
    %27 = arith.mulf %26, %25 : vector<8x256xf32>
    %28 = arith.maximumf %25, %27 : vector<8x256xf32>
    %c0_31 = arith.constant 0 : index
    %c0_32 = arith.constant 0 : index
    %c0_33 = arith.constant 0 : index
    %29 = vector.load %arg6[%c0_31, %c0_32, %c0_33] : memref<1x8x256xf32, #tpu.memory_space<vmem>>, vector<1x8x256xf32>
    %30 = vector.shape_cast %29 : vector<1x8x256xf32> to vector<8x256xf32>
    %31 = vector.shape_cast %28 : vector<8x256xf32> to vector<1x8x256xf32>
    tpu.vector_store %arg6[%c0_31, %c0_32, %c0_33], %31 {strides = array<i32>} : memref<1x8x256xf32, #tpu.memory_space<vmem>>, vector<1x8x256xf32>,
    return
  }
  func.func @transform_0(%arg0: i32, %arg1: i32) -> (i32, i32, i32) {
    %c0_i32 = arith.constant 0 : i32
    %c0_i32_0 = arith.constant 0 : i32
    return %arg0, %c0_i32, %arg1 : i32, i32, i32
  }
  func.func @transform_1(%arg0: i32, %arg1: i32) -> (i32, i32, i32) {
    %c1_i32 = arith.constant 1 : i32
    %0 = arith.addi %arg1, %c1_i32 : i32
    %c2_i32 = arith.constant 2 : i32
    %1 = arith.muli %0, %c2_i32 : i32
    %c0_i32 = arith.constant 0 : i32
    %c0_i32_0 = arith.constant 0 : i32
    return %arg0, %c0_i32, %1 : i32, i32, i32
  }
  func.func @transform_2(%arg0: i32, %arg1: i32) -> (i32, i32) {
    %c0_i32 = arith.constant 0 : i32
    %c0_i32_0 = arith.constant 0 : i32
    %c0_i32_1 = arith.constant 0 : i32
    return %c0_i32, %c0_i32_0 : i32, i32
  }
  func.func @transform_3(%arg0: i32, %arg1: i32) -> (i32, i32) {
    %c0_i32 = arith.constant 0 : i32
    %c0_i32_0 = arith.constant 0 : i32
    %c0_i32_1 = arith.constant 0 : i32
    return %c0_i32, %c0_i32_0 : i32, i32
  }
  func.func @transform_4(%arg0: i32, %arg1: i32) -> (i32, i32, i32) {
    %c0_i32 = arith.constant 0 : i32
    %c0_i32_0 = arith.constant 0 : i32
    return %arg0, %c0_i32, %arg1 : i32, i32, i32
  }
}

</mosaic_0001>

<bundles_post_ra>
// kernel: tpu_custom_call.1
= control target key start
LH: loop header
LB: loop body
LE: loop exit
PB: predicated region body
PF: predicated region fallthrough
CT: control target
= control target key end

     0   :  { %s1317_s0 = inlined_call_operand.hbm [shape: f32[2,16,384], index: 0, kind: input, shape index: {}]   ;;  %s1318_s1 = inlined_call_operand.hbm [shape: f32[2,16,384], index: 1, kind: input, shape index: {}]   ;;  %s1319_s2 = inlined_call_operand.vmem [shape: f32[8,112], index: 2, kind: input, shape index: {}]   ;;  %s1320_s3 = inlined_call_operand.vmem [shape: f32[8,1], index: 3, kind: input, shape index: {}]   ;;  %s1321_s4 = inlined_call_operand.hbm [shape: f32[2,8,256], index: 4, kind: output, shape index: {}]  }
   0x1   :  { %1325 = sst [smem:[#allocation17_spill]] %s1317_s0 }
   0x2   :  { %9 = vsyncpa [#allocation5], 0 }
   0x3   :  { %11 = vsyncpa [#allocation5 + $0x1], 0 }
   0x4   :  { %12 = vsyncpa [#allocation8], 0 }
   0x5   :  { %14 = vsyncpa [#allocation8 + $0x1], 0 }
   0x6   :  { %15 = vsyncpa [#allocation6], 0 }
   0x7   :  { %17 = vsyncpa [#allocation6 + $0x1], 0  ;;  %s1136_s15 = smov 0   ;;  %s1138_s16 = smov 0  }
   0x8   :  { %s1140_s17 = smov 0   ;;  %s1142_s18 = smov 0  }
   0x9   :  { %s1144_s19 = smov 0   ;;  %s1146_s20 = smov 0  }
   0xa LB: > { %1326 = sst [smem:[#allocation13_spill]] %s1085_s17  ;;  %s760_s21 = sadd.s32 4294967295, %s1097_s20   ;;  %s1097_s20 = sphi %s1146_s20, %s23_s20   ;;  %s1093_s19 = sphi %s1144_s19, %s1339_s19   ;;  %s1089_s18 = sphi %s1142_s18, %s1338_s18   ;;  %s1085_s17 = sphi %s1140_s17, %s1337_s17   ;;  %s1081_s16 = sphi %s1138_s16, %s1341_s16   ;;  %s1077_s15 = sphi %s1136_s15, %s1340_s15  }
   0xb   : > { %1327 = sst [smem:[#allocation14_spill]] %s1093_s19  ;;  %s761_s22 = sadd.s32 4294967294, %s1097_s20  }
   0xc   : > { %s35_s23 = sadd.s32 1, %s1093_s19  ;;  %s44_s24 = sadd.s32 1, %s1085_s17 }
   0xd   : > { %p37_p0 = scmp.ge.s32.totalorder %s35_s23, 2  ;;  %p51_p1 = scmp.ne.s32.totalorder %s1085_s17, %s1081_s16 }
   0xe   : > { %p52_p2 = scmp.eq.s32.totalorder %s1097_s20, 0  ;;  %p57_p3 = scmp.ne.s32.totalorder %s1081_s16, %s1077_s15 }
   0xf   : > { %s1343_s23 = smov (%p37_p0, %s35_s23), 0  ;;  %p58_p5 = scmp.eq.s32.totalorder %s760_s21, 0 }
  0x10   : > { %1328 = sst [smem:[#allocation15_spill]] %s1343_s23  ;;  %p1177_p4 = por %p52_p2, %p51_p1 }
  0x11   : > { %s39_s26 = ssub.s32 %s1093_s19, %s1343_s23  ;;  %p157_p6 = scmp.eq.s32.totalorder %s760_s21, 1 }
  0x12   : > { %p42_p7 = scmp.eq.s32.totalorder %s39_s26, 0  ;;  %p1183_p8 = por %p58_p5, %p57_p3 }
  0x13   : > { %p1187_p9 = por %p157_p6, %p51_p1  ;;  %p163_p10 = scmp.eq.s32.totalorder %s761_s22, 1 }
  0x14   : > { %s1192_s29 = scalar_select %p42_p7, %s1085_s17, %s44_s24  }
  0x15   : > { %p1194_p11 = por %p163_p10, %p57_p3  ;;  %p763_p12 = scmp.ge.s32.totalorder %s1097_s20, 2 }
  0x16   : > { %1332 = sst [smem:[#allocation16_spill]] %s1192_s29  ;;  %p798_p13 = scmp.lt.s32.totalorder %s1097_s20, 2 }
  0x17   : > { %s1201_s5 = sand.u32 1, %s1085_s17   ;;  %s780_s7 = smul.u32 48, %s1093_s19 }
  0x18   : > { %s764_s6 = sshll.u32 %s1201_s5, 5  ;;  %p1207_p0 = pnand %p798_p13, %p1177_p4 }
  0x19   : > { %s193_s8 = scalar_lea.vmem [#allocation4], %s764_s6  ;;  %s1335_s0 = sld [smem:[#allocation17_spill]] }
  0x1a   : > { %s211_s9 = sshll.u32 %s193_s8, 4  ;;  %s190_s21 = scalar_lea.sflag [#allocation5], %s1201_s5  ;;  %s212_s9 = int_to_ptr.vmem [resolvable:$true] %s211_s9 }
  0x1b   : > { %s1099_s22 = smov 384   ;;  %s1100_s24 = smov 256  }
  0x1c   : > { %s1101_s26 = smov 16   ;;  %p768_p1 = scmp.ge.s32.totalorder %s1097_s20, 1 }
  0x1d   : > { %p244_p2 = scmp.lt.s32.totalorder %s1097_s20, 3  ;;  %s766_s25 = sshll.u32 %s1201_s5, 4 }
  0x1e   : > { %s691_s11 = scalar_lea.hbm %s1318_s1, %s780_s7  ;;  %s225_s12 = scalar_lea.vmem [#allocation7], %s766_s25 }
  0x1f   : > { %s206_s13 = scalar_lea.hbm %s1335_s0, %s780_s7  ;;  %p245_p3 = pnand %p768_p1, %p244_p2 }
  0x20   : > { %s209_s14 = sshll.u32 %s206_s13, 4  ;;  %s236_s0 = sshll.u32 %s225_s12, 4  ;;  %s210_s14 = int_to_ptr.hbm [resolvable:$true] %s209_s14  ;;  %s237_s0 = int_to_ptr.vmem [resolvable:$true] %s236_s0 }
  0x21   : > { %790 = dma.hbm_to_vmem [thread:$0]  (!%p1207_p0), %s210_s14, 512, %s212_s9, %s190_s21, %s1099_s22, %s1100_s24, %s1101_s26  }
  0x22   : > { %s692_s13 = scalar_lea.hbm %s691_s11, 16  ;;  %s222_s19 = scalar_lea.sflag [#allocation8], %s1201_s5 }
  0x23   : > { %s234_s23 = sshll.u32 %s692_s13, 4  ;;  %s1102_s29 = smov 128   ;;  %s235_s23 = int_to_ptr.hbm [resolvable:$true] %s234_s23 }
  0x24   : > { %s1103_s17 = smov 8   ;;  %248 = sbr.rel (%p245_p3) target bundleno = 349 (0x15d), region = 36 }
  0x25   : > { %793 = dma.hbm_to_vmem [thread:$0]  (!%p1207_p0), %s235_s23, 256, %s237_s0, %s222_s19, %s1099_s22, %s1102_s29, %s1103_s17  }
  0x26   : > { %s1227_s9 = sand.u32 (!%p245_p3), 1, %s1081_s16  }
  0x27   : > { %s769_s14 = sshll.u32 (!%p245_p3), %s1227_s9, 5  ;;  %s251_s7 = scalar_lea.sflag (!%p245_p3), [#allocation5], %s1227_s9 }
  0x28   : > { %s254_s21 = scalar_lea.vmem (!%p245_p3), [#allocation4], %s769_s14 }
  0x29   : > { %1064 = dma.done.wait (%p1183_p8), %s251_s7, 512  }
  0x2a   : > { %1066 = vsyncadd (%p1183_p8), %s251_s7, 4294966784  ;;  %s770_s0 = sshll.u32 %s1227_s9, 4  ;;  %s261_s17 = scalar_lea.sflag [#allocation8], %s1227_s9 }
  0x2b   : > { %s264_s19 = scalar_lea.vmem [#allocation7], %s770_s0 }
  0x2c   : > { %1068 = dma.done.wait (%p1183_p8), %s261_s17, 256  }
  0x2d   : > { %1070 = vsyncadd (%p1183_p8), %s261_s17, 4294967040  ;;  %v1243_v0 = vld [vmem:[%s254_s21 + $0x10] sm:$0xff]  ;;  %v1245_v1 = vld [vmem:[%s254_s21 + $0x18] sm:$0xff]  ;;  %s1104_s23 = smov 122   ;;  %s1105_s27 = smov 123   ;;  %vm532_vm0 = vcmask 998400  }
  0x2e   : > { %v1247_v2 = vld [vmem:[%s254_s21 + $0x8] sm:$0xff]  ;;  %v860_v3 = vpack.i.bf16 %v1245_v1, %v1243_v0  ;;  %v311_v4 = vld [vmem:[%s264_s19] sm:$0xff]  ;;  %s1106_s29 = smov 124   ;;  %s1107_s5 = smov 125   ;;  %vm495_vm1 = vcmask 1006592   ;;  %vm458_vm2 = vcmask 1014784  }
  0x2f   : > { %v1251_v5 = vld [vmem:[%s254_s21] sm:$0xff]  ;;  %v312_v6 = vld [vmem:[%s264_s19 + $0x8] sm:$0xff]  ;;  %v870_v7 = vpack.i.bf16 %v311_v4, %v1247_v2  ;;  %s1108_s10 = smov 126   ;;  %s1109_s22 = smov 127   ;;  %v1110_v50 = vmov 0   ;;  %vm421_vm3 = vcmask 1022976  }
  0x30   : > { %v880_v8 = vpack.i.bf16 %v1251_v5, %v312_v6  ;;  %861 = vrot.lane.b32.xlu0 %v860_v3, %s1104_s23  ;;  %v574_v48 = vld [vmem:[%s1320_s3] sm:$0xff]  ;;  %vm384_vm4 = vcmask 1031168   ;;  %vm347_vm5 = vcmask 1039360   ;;  %vm580_vm6 = vcmask 916480   ;;  %s779_s8 = sshll.u32 %s1089_s18, 4  ;;  %s294_s14 = scalar_lea.vmem [#allocation9], %s770_s0 }
  0x31   : > { %871 = vrot.lane.b32.xlu1 %v870_v7, %s1104_s23  ;;  %950 = vset.pattern.permute.xlu0 %v1110_v50  ;;  %s644_s13 = scalar_lea.hbm %s1321_s4, %s779_s8  ;;  %s646_s7 = sshll.u32 %s294_s14, 4  ;;  %s647_s7 = int_to_ptr.vmem [resolvable:$true] %s646_s7 }
  0x32   : > { %881 = vrot.lane.b32.xlu2 %v880_v8, %s1105_s27  ;;  %s648_s21 = sshll.u32 %s644_s13, 4  ;;  %s631_s18 = scalar_lea.sflag [#allocation6], %s1227_s9  ;;  %s649_s21 = int_to_ptr.hbm [resolvable:$true] %s648_s21 }
  0x33   : > { %s1025_s17 = sshra.s32 %s649_s21, 4  ;;  %s1031_s0 = scalar_lea.hbm %s1321_s4, 32  ;;  %s1026_s17 = int_to_ptr.hbm [resolvable:$true] %s1025_s17 }
  0x34   : > { %s1027_s19 = scalar_lea.hbm %s1026_s17, 16  ;;  %p1032_p7 = scmp.lt.s32.totalorder %s1026_s17, %s1321_s4 }
  0x35   : > { %p1028_p4 = scmp.ne.s32.totalorder %s1026_s17, %s1027_s19  ;;  %p1033_p8 = scmp.lt.s32.totalorder %s1031_s0, %s1027_s19 }
  0x37   : > { %p1029_p5 = pnand %p1028_p4, %p1187_p9  ;;  %p1034_p10 = por %p1033_p8, %p1032_p7 }
  0x38   : > { %866 = vrot.lane.b32.xlu0 %v880_v8, %s1104_s23 }
  0x39   : > { %876 = vrot.lane.b32.xlu1 %v860_v3, %s1105_s27  ;;  %p1030_p6 = pneg %p1029_p5 }
  0x3a   : > { %886 = vrot.lane.b32.xlu2 %v870_v7, %s1105_s27 }
  0x3b   : > { %p1035_p13 = pnand %p1034_p10, %p1030_p6 }
  0x40   : > { %891 = vrot.lane.b32.xlu0 %v860_v3, %s1106_s29 }
  0x41   : > { %896 = vrot.lane.b32.xlu1 %v880_v8, %s1106_s29 }
  0x42   : > { %901 = vrot.lane.b32.xlu2 %v870_v7, %s1106_s29 }
  0x48   : > { %906 = vrot.lane.b32.xlu0 %v860_v3, %s1107_s5 }
  0x49   : > { %911 = vrot.lane.b32.xlu1 %v880_v8, %s1107_s5 }
  0x4a   : > { %916 = vrot.lane.b32.xlu2 %v870_v7, %s1107_s5 }
  0x50   : > { %921 = vrot.lane.b32.xlu0 %v860_v3, %s1108_s10 }
  0x51   : > { %926 = vrot.lane.b32.xlu1 %v880_v8, %s1108_s10 }
  0x52   : > { %931 = vrot.lane.b32.xlu2 %v870_v7, %s1108_s10 }
  0x58   : > { %936 = vrot.lane.b32.xlu0 %v860_v3, %s1109_s22 }
  0x59   : > { %941 = vrot.lane.b32.xlu1 %v880_v8, %s1109_s22 }
  0x5a   : > { %946 = vrot.lane.b32.xlu2 %v870_v7, %s1109_s22 }
  0x60   : > { %577 = vperm.xlu0 %950, %v574_v48  }
  0x8c   : > { %v882_v9 = vpop.permute.xlu2 %881 }
  0x8d   : > { %v884_v25 = vunpack.i.h.bf16 %v882_v9  ;;  %v883_v29 = vunpack.i.l.bf16 %v882_v9 }
  0x94   : > { %v887_v11 = vpop.permute.xlu2 %886 }
  0x95   : > { %v888_v26 = vunpack.i.l.bf16 %v887_v11  ;;  %v889_v30 = vunpack.i.h.bf16 %v887_v11 }
  0x97   : > { %v496_v33 = vsel %vm495_vm1, %v884_v25, %v888_v26  ;;  %v497_v41 = vsel %vm495_vm1, %v888_v26, %v889_v30 }
  0x9c   : > { %v902_v17 = vpop.permute.xlu2 %901 }
  0x9d   : > { %v904_v35 = vunpack.i.h.bf16 %v902_v17  ;;  %v903_v38 = vunpack.i.l.bf16 %v902_v17 }
  0x9f   : > { %v460_v47 = vsel %vm458_vm2, %v903_v38, %v904_v35 }
  0xa2   : > { %v862_v10 = vpop.permute.xlu0 %861 }
  0xa3   : > { %v864_v12 = vunpack.i.h.bf16 %v862_v10  ;;  %v863_v13 = vunpack.i.l.bf16 %v862_v10  ;;  %v872_v14 = vpop.permute.xlu1 %871 }
  0xa4   : > { %v874_v18 = vunpack.i.h.bf16 %v872_v14  ;;  %v873_v19 = vunpack.i.l.bf16 %v872_v14  ;;  %v917_v44 = vpop.permute.xlu2 %916 }
  0xa5   : > { %v535_v15 = vsel %vm532_vm0, %v863_v13, %v864_v12  ;;  %v919_v51 = vunpack.i.h.bf16 %v917_v44  ;;  %v918_v54 = vunpack.i.l.bf16 %v917_v44 }
  0xa6   : > { %586 = vmatpush.msra.mxu0 %v535_v15  ;;  %v534_v32 = vsel %vm532_vm0, %v873_v19, %v874_v18 }
  0xa7   : > { %v423_v61 = vsel %vm421_vm3, %v918_v54, %v919_v51 }
  0xaa   : > { %v867_v16 = vpop.permute.xlu0 %866 }
  0xab   : > { %v877_v20 = vpop.permute.xlu1 %876  ;;  %v869_v21 = vunpack.i.h.bf16 %v867_v16  ;;  %v868_v22 = vunpack.i.l.bf16 %v867_v16 }
  0xac   : > { %v879_v23 = vunpack.i.h.bf16 %v877_v20  ;;  %v878_v24 = vunpack.i.l.bf16 %v877_v20  ;;  %v932_v62 = vpop.permute.xlu2 %931 }
  0xad   : > { %v533_v27 = vsel %vm532_vm0, %v869_v21, %v873_v19  ;;  %v536_v28 = vsel %vm532_vm0, %v864_v12, %v868_v22  ;;  %v934_v3 = vunpack.i.h.bf16 %v932_v62  ;;  %v933_v7 = vunpack.i.l.bf16 %v932_v62 }
  0xae   : > { %587 = vmatpush.msra.mxu0 %v533_v27  ;;  %606 = vmatpush.msra.mxu1 %v536_v28  ;;  %v498_v31 = vsel %vm495_vm1, %v878_v24, %v879_v23  ;;  %v499_v34 = vsel %vm495_vm1, %v879_v23, %v883_v29  ;;  %v545_v29 = vld [vmem:[%s1319_s2] sm:$0xff] }
  0xaf   : > { %v386_v14 = vsel %vm384_vm4, %v933_v7, %v934_v3 }
  0xb0   : > { %588 = vmatpush.msra.mxu0 %v498_v31  ;;  %607 = vmatpush.msra.mxu1 %v534_v32 }
  0xb2   : > { %v892_v36 = vpop.permute.xlu0 %891  ;;  %589 = vmatpush.msra.mxu0 %v496_v33  ;;  %608 = vmatpush.msra.mxu1 %v499_v34 }
  0xb3   : > { %v897_v37 = vpop.permute.xlu1 %896  ;;  %v894_v39 = vunpack.i.h.bf16 %v892_v36  ;;  %v893_v40 = vunpack.i.l.bf16 %v892_v36 }
  0xb4   : > { %v899_v42 = vunpack.i.h.bf16 %v897_v37  ;;  %v898_v43 = vunpack.i.l.bf16 %v897_v37  ;;  %609 = vmatpush.msra.mxu1 %v497_v41  ;;  %v947_v16 = vpop.permute.xlu2 %946 }
  0xb5   : > { %v461_v45 = vsel %vm458_vm2, %v893_v40, %v894_v39  ;;  %v949_v17 = vunpack.i.h.bf16 %v947_v16  ;;  %v948_v20 = vunpack.i.l.bf16 %v947_v16 }
  0xb6   : > { %590 = vmatpush.msra.mxu0 %v461_v45  ;;  %v462_v46 = vsel %vm458_vm2, %v894_v39, %v898_v43  ;;  %v459_v49 = vsel %vm458_vm2, %v899_v42, %v903_v38 }
  0xb7   : > { %610 = vmatpush.msra.mxu1 %v462_v46  ;;  %v349_v27 = vsel %vm347_vm5, %v948_v20, %v949_v17 }
  0xb8   : > { %591 = vmatpush.msra.mxu0 %v459_v49 }
  0xb9   : > { %611 = vmatpush.msra.mxu1 %v460_v47 }
  0xba   : > { %v907_v52 = vpop.permute.xlu0 %906 }
  0xbb   : > { %v912_v53 = vpop.permute.xlu1 %911  ;;  %v909_v55 = vunpack.i.h.bf16 %v907_v52  ;;  %v908_v56 = vunpack.i.l.bf16 %v907_v52 }
  0xbc   : > { %v914_v57 = vunpack.i.h.bf16 %v912_v53  ;;  %v913_v58 = vunpack.i.l.bf16 %v912_v53 }
  0xbd   : > { %v424_v59 = vsel %vm421_vm3, %v908_v56, %v909_v55 }
  0xbe   : > { %592 = vmatpush.msra.mxu0 %v424_v59  ;;  %v425_v60 = vsel %vm421_vm3, %v909_v55, %v913_v58  ;;  %v422_v63 = vsel %vm421_vm3, %v914_v57, %v918_v54 }
  0xbf   : > { %612 = vmatpush.msra.mxu1 %v425_v60 }
  0xc0   : > { %593 = vmatpush.msra.mxu0 %v422_v63 }
  0xc1   : > { %613 = vmatpush.msra.mxu1 %v423_v61 }
  0xc2   : > { %v922_v4 = vpop.permute.xlu0 %921 }
  0xc3   : > { %v927_v6 = vpop.permute.xlu1 %926  ;;  %v924_v8 = vunpack.i.h.bf16 %v922_v4  ;;  %v923_v9 = vunpack.i.l.bf16 %v922_v4 }
  0xc4   : > { %v929_v10 = vunpack.i.h.bf16 %v927_v6  ;;  %v928_v11 = vunpack.i.l.bf16 %v927_v6 }
  0xc5   : > { %v387_v12 = vsel %vm384_vm4, %v923_v9, %v924_v8 }
  0xc6   : > { %594 = vmatpush.msra.mxu0 %v387_v12  ;;  %v388_v13 = vsel %vm384_vm4, %v924_v8, %v928_v11  ;;  %v385_v15 = vsel %vm384_vm4, %v929_v10, %v933_v7 }
  0xc7   : > { %614 = vmatpush.msra.mxu1 %v388_v13 }
  0xc8   : > { %595 = vmatpush.msra.mxu0 %v385_v15 }
  0xc9   : > { %615 = vmatpush.msra.mxu1 %v386_v14 }
  0xca   : > { %v937_v18 = vpop.permute.xlu0 %936 }
  0xcb   : > { %v942_v19 = vpop.permute.xlu1 %941  ;;  %v939_v21 = vunpack.i.h.bf16 %v937_v18  ;;  %v938_v22 = vunpack.i.l.bf16 %v937_v18 }
  0xcc   : > { %v944_v23 = vunpack.i.h.bf16 %v942_v19  ;;  %v943_v24 = vunpack.i.l.bf16 %v942_v19 }
  0xcd   : > { %v350_v25 = vsel %vm347_vm5, %v938_v22, %v939_v21 }
  0xce   : > { %596 = vmatpush.msra.mxu0 %v350_v25  ;;  %v351_v26 = vsel %vm347_vm5, %v939_v21, %v943_v24  ;;  %v348_v28 = vsel %vm347_vm5, %v944_v23, %v948_v20 }
  0xcf   : > { %616 = vmatpush.msra.mxu1 %v351_v26 }
  0xd0   : > { %597 = vmatpush.msra.mxu0 %v348_v28 }
  0xd1   : > { %617 = vmatpush.msra.mxu1 %v349_v27 }
  0xd2   : > { %598 = vmatpush.msra.mxu0 %v1243_v0  ;;  %v578_v30 = vpop.permute.xlu0 %577 }
  0xd3   : > { %618 = vmatpush.msra.mxu1 %v1245_v1 }
  0xd4   : > { %599 = vmatpush.msra.mxu0 %v1251_v5 }
  0xd5   : > { %619 = vmatpush.msra.mxu1 %v1247_v2  ;;  %772 = vmatmul.msk.f32.vlgmr.msra.gmra.mxu0 %vm580_vm6, %v545_v29 }
  0xd6   : > { %773 = vmatmul.msk.f32.vlgmr.msra.gmra.mxu1 %vm580_vm6, %v545_v29 }
 0x152   : > { %v601_v31 = vpop.f32.mrf.mxu0 }
 0x153   : > { %v602_v0 = vadd.f32 %v601_v31, %v578_v30  ;;  %v621_v32 = vpop.f32.mrf.mxu1 }
 0x154   : > { %v622_v33 = vadd.f32 %v621_v32, %v578_v30 }
 0x155   : > { %v624_v34 = vmul.f32 0.2, %v602_v0 }
 0x156   : > { %v625_v1 = vmul.f32 0.2, %v622_v33 }
 0x157   : > { %v626_v2 = vmax.f32 %v602_v0, %v624_v34 }
 0x158   : > { %v627_v5 = vmax.f32 %v622_v33, %v625_v1 }
 0x159   : > { %628 = vst [vmem:[%s294_s14] sm:$0xff] %v626_v2 }
 0x15a   : > { %629 = vst [vmem:[%s294_s14 + $0x8] sm:$0xff] %v627_v5 }
 0x15b   : > { %1038 = shalt.err (!%p1035_p13)
}
 0x15c   : > { %785 = dma.vmem_to_hbm [thread:$0]  (%p1187_p9), %s647_s7, 256, %s649_s21, %s631_s18  }
 0x15d PF: > { %s660_s9 = sand.u32 1, %s1077_s15   ;;  %p795_p0 = pnand %p763_p12, %p1194_p11 }
 0x15e   : > { %s661_s10 = scalar_lea.sflag [#allocation6], %s660_s9 }
 0x15f   : > { %p796_p1 = pneg %p795_p0 }
 0x161   : > { %1072 = dma.done.wait (%p796_p1), %s661_s10, 256  }
 0x162   : > { %1074 = vsyncadd (%p796_p1), %s661_s10, 4294967040  ;;  %s23_s20 = sadd.s32 1, %s1097_s20   ;;  %s1336_s22 = sld [smem:[#allocation13_spill]] }
 0x163   : > { %p20_p2 = scmp.ge.s32.totalorder %s23_s20, 4   ;;  %s1337_s17 = sld [smem:[#allocation16_spill]] }
 0x164   : > { %s1338_s18 = sld [smem:[#allocation14_spill]]  ;;  %s1340_s15 = smov %s1081_s16 }
 0x165   : > { %s1339_s19 = sld [smem:[#allocation15_spill]]  ;;  %22 = sbr.rel (!%p20_p2) target bundleno = 10 (0xa), region = 94 }
 0x168   : > { %s1341_s16 = smov %s1336_s22 }
 0x16a   :  { %667 = vsyncpa [#allocation5], 1 }
 0x16b   :  { %669 = vsyncpa [#allocation5 + $0x1], 1 }
 0x16c   :  { %670 = vsyncpa [#allocation8], 1 }
 0x16d   :  { %672 = vsyncpa [#allocation8 + $0x1], 1 }
 0x16e   :  { %673 = vsyncpa [#allocation6], 1 }
 0x16f   :  { %675 = vsyncpa [#allocation6 + $0x1], 1 }

</bundles_post_ra>
